<compile_context>
chip_gen: v6e
topology: v6e:2x2x1
jax: 0.10.0
libtpu: 0.0.40
codegen_flags: <defaults>
</compile_context>

<pallas_src>
import math

import jax
import jax.numpy as jnp
from jax import lax
from jax.experimental import pallas as pl
from jax.experimental.pallas import tpu as pltpu


def _margin_constants(margin):
    return (math.cos(margin),
            math.sin(margin),
            math.cos(math.pi - margin),
            math.sin(math.pi - margin) * margin)


def _largest_divisor(n, cap):
    d = min(n, cap)
    while n % d:
        d -= 1
    return d


# --------------------------------------------------------------------------
# pass 1: per-row normalization + margin statistics
# --------------------------------------------------------------------------
def make_pass1_kernel(margin):
    cos_m, sin_m, threshold, mm = _margin_constants(margin)

    def kernel(feat_ref, wtgt_ref, featn_ref, ctm_ref, ftl_ref, tlog_ref):
        feats = feat_ref[...]                                      # (tb, D) f32
        fnorm = jnp.sqrt(jnp.sum(feats * feats, axis=-1, keepdims=True))
        feats_n = feats / jnp.maximum(fnorm, 1e-12)                # F.normalize(dim=1)
        featn_ref[...] = feats_n.astype(jnp.bfloat16)              # MXU operand for pass 2

        w_t = wtgt_ref[...]                                        # raw weight[target] rows
        wnorm = jnp.sqrt(jnp.sum(w_t * w_t, axis=-1, keepdims=True))
        w_t_n = w_t / jnp.maximum(wnorm, 1e-12)

        # target_logit = <feat_n, w_n[target]> in f32 (clamped); same quantity
        # PyTorch reads off the target column of the f32 cos_theta matrix.
        target_logit = jnp.clip(
            jnp.sum(feats_n * w_t_n, axis=-1, keepdims=True), -1.0, 1.0)
        tlog_ref[...] = target_logit                               # for the `t` buffer update

        sin_theta = jnp.sqrt(1.0 - target_logit * target_logit)
        cos_theta_m = target_logit * cos_m - sin_theta * sin_m
        ctm_ref[...] = cos_theta_m
        ftl_ref[...] = jnp.where(target_logit > threshold,
                                 cos_theta_m, target_logit - mm)

    return kernel


# --------------------------------------------------------------------------
# pass 2: tiled bf16 matmul + fused margin epilogue (weight-resident grid)
# --------------------------------------------------------------------------
def make_pass2_kernel(scale):
    s = float(scale)

    def kernel(feat_ref, wt_ref, tgt_ref, ctm_ref, ftl_ref, tnew_ref, out_ref):
        # (tile_b, D) @ (D, tile_c): canonical [M,K] x [K,N] MXU layout, bf16
        # operands, f32 accumulation, no in-kernel transpose of the weight.
        cos = jnp.dot(feat_ref[...], wt_ref[...],
                      preferred_element_type=jnp.float32)
        cos = jnp.clip(cos, -1.0, 1.0)

        tb, tc = cos.shape
        # Local one-hot: shift the (tile_b,1) target instead of offsetting the
        # whole (tile_b,tile_c) iota.
        col = lax.broadcasted_iota(jnp.int32, (tb, tc), 1)
        tgt_local = tgt_ref[...] - pl.program_id(0) * tc           # (tile_b, 1)
        onehot = col == tgt_local

        t_new = tnew_ref[0, 0]                                     # SMEM scalar
        # Fused epilogue: scatter(final_target_logit) over hard-example reweight.
        out = jnp.where(
            onehot,
            ftl_ref[...],                                          # (tile_b, 1) broadcast
            jnp.where(cos > ctm_ref[...], cos * (t_new + cos), cos))
        out_ref[...] = (out * s).astype(out_ref.dtype)

    return kernel


# --------------------------------------------------------------------------
# wrapper
# --------------------------------------------------------------------------
def arcface_logits(features, weight, targets, t, *,
                   scale=64.0, margin=0.35, tile_b=None, tile_c=None,
                   out_dtype=jnp.float32):
    B, D = features.shape
    C, D2 = weight.shape
    assert D == D2

    # ---- wrapper-side weight prep (static parameter in eval mode; in a real
    # module the normalized, transposed bf16 weight should be cached across
    # calls instead of being recomputed here) ----
    w_inv = 1.0 / jnp.maximum(
        jnp.sqrt(jnp.sum(weight * weight, axis=-1, keepdims=True)), 1e-12)
    w_t_bf16 = jnp.transpose((weight * w_inv).astype(jnp.bfloat16))  # (D, C) bf16
    # Gather RAW rows; normalization of just these B rows happens in pass 1
    # (avoids materializing a full f32 normalized weight only for the gather).
    w_tgt_raw = jnp.take(weight, targets, axis=0)                    # (B, D) f32

    targets2d = targets.reshape(B, 1).astype(jnp.int32)

    # ---- pass 1: gridded over B (double-buffered DMA, no single-block cliff) ----
    tile_b1 = _largest_divisor(B, 512)
    featn_bf16, ctm, ftl, tlog = pl.pallas_call(
        make_pass1_kernel(margin),
        out_shape=(
            jax.ShapeDtypeStruct((B, D), jnp.bfloat16),
            jax.ShapeDtypeStruct((B, 1), jnp.float32),
            jax.ShapeDtypeStruct((B, 1), jnp.float32),
            jax.ShapeDtypeStruct((B, 1), jnp.float32),
        ),
        grid=(B // tile_b1,),
        in_specs=[
            pl.BlockSpec((tile_b1, D), lambda i: (i, 0)),   # features f32
            pl.BlockSpec((tile_b1, D), lambda i: (i, 0)),   # raw weight[target] rows
        ],
        out_specs=(
            pl.BlockSpec((tile_b1, D), lambda i: (i, 0)),
            pl.BlockSpec((tile_b1, 1), lambda i: (i, 0)),
            pl.BlockSpec((tile_b1, 1), lambda i: (i, 0)),
            pl.BlockSpec((tile_b1, 1), lambda i: (i, 0)),
        ),
        compiler_params=pltpu.CompilerParams(
            dimension_semantics=("parallel",),
            vmem_limit_bytes=32 * 1024 * 1024),
    )(features, w_tgt_raw)

    # running buffer: t = 0.01 * mean(target_logit) + 0.99 * t  (tiny fused
    # scalar reduction; keeps pass 1 free of carried state)
    t_new = jnp.mean(tlog) * 0.01 + 0.99 * t.reshape(()).astype(jnp.float32)
    t_new2d = t_new.reshape(1, 1)

    # ---- pass 2: weight-resident tiled matmul + fused margin epilogue ----
    # Grid = (class tiles OUTER, batch tiles INNER): the weight BlockSpec index
    # depends only on the outer axis, so each weight tile is read from HBM
    # exactly once; the small bf16 feature tiles stream on the inner axis.
    if tile_b is None:
        tile_b = _largest_divisor(B, 512)
    if tile_c is None:
        tile_c = _largest_divisor(C, 2048)
    assert B % tile_b == 0 and C % tile_c == 0, "pad B / C to tile multiples"
    nct = C // tile_c
    grid = (nct, B // tile_b)

    out_bytes = jnp.dtype(out_dtype).itemsize
    # Double-buffered VMEM footprint (sized so defaults stay well below the
    # 64 MiB/TC physical VMEM on v7x; v5e/v6e have 128 MiB of headroom).
    vmem_need = 2 * (tile_b * D * 2            # feature tile (bf16)
                     + D * tile_c * 2          # weight^T tile (bf16)
                     + tile_b * tile_c * out_bytes
                     + 3 * tile_b * 4)         # per-row scalars
    assert vmem_need + (2 << 20) <= (56 << 20), \
        "tile footprint too large for per-TC VMEM (v7x has 64 MiB/TC)"
    vmem_limit = max(vmem_need + (2 << 20), 32 * 1024 * 1024)

    bytes_accessed = (C * D * 2                # weight^T bf16: read once (resident)
                      + nct * B * D * 2        # bf16 features: re-streamed per class tile
                      + nct * B * 3 * 4        # per-row scalars re-streamed
                      + B * C * out_bytes)     # logits written once

    logits = pl.pallas_call(
        make_pass2_kernel(scale),
        out_shape=jax.ShapeDtypeStruct((B, C), out_dtype),
        grid=grid,
        in_specs=[
            pl.BlockSpec((tile_b, D), lambda j, i: (i, 0)),      # feats bf16 (streamed)
            pl.BlockSpec((D, tile_c), lambda j, i: (0, j)),      # weight^T bf16 (resident)
            pl.BlockSpec((tile_b, 1), lambda j, i: (i, 0)),      # targets
            pl.BlockSpec((tile_b, 1), lambda j, i: (i, 0)),      # cos_theta_m
            pl.BlockSpec((tile_b, 1), lambda j, i: (i, 0)),      # final target logit
            pl.BlockSpec(memory_space=pltpu.MemorySpace.SMEM),   # t_new scalar
        ],
        out_specs=pl.BlockSpec((tile_b, tile_c), lambda j, i: (i, j)),
        compiler_params=pltpu.CompilerParams(
            # Outer (class) axis parallel: on v7x the 2 TCs shard the
            # resident-weight axis, so each TC reads only half the weight.
            dimension_semantics=("parallel", "parallel"),
            vmem_limit_bytes=vmem_limit),
        cost_estimate=pl.CostEstimate(
            flops=2 * B * C * D, transcendentals=0,
            bytes_accessed=bytes_accessed),
    )(featn_bf16, w_t_bf16, targets2d, ctm, ftl, t_new2d)

    return logits, t_new.reshape(1)


# --------------------------------------------------------------------------
# pure-JAX reference (mirrors the PyTorch eval forward)
# --------------------------------------------------------------------------
def arcface_logits_ref(features, weight, targets, t, *, scale=64.0, margin=0.35):
    """The big matmul uses bf16 MXU operands with f32 accumulation to mirror
    the kernel's deliberate perf tradeoff (PyTorch is f32 end-to-end; the cos
    values differ by O(1e-3), which only matters for borderline mask elements)."""
    cos_m, sin_m, threshold, mm = _margin_constants(margin)

    fn = features / jnp.maximum(
        jnp.linalg.norm(features, axis=1, keepdims=True), 1e-12)
    wn = weight / jnp.maximum(
        jnp.linalg.norm(weight, axis=1, keepdims=True), 1e-12)

    cos_theta = jnp.clip(
        jnp.dot(fn.astype(jnp.bfloat16), wn.astype(jnp.bfloat16).T,
                preferred_element_type=jnp.float32), -1.0, 1.0)

    target_logit = jnp.clip(
        jnp.sum(fn * wn[targets], axis=-1, keepdims=True), -1.0, 1.0)
    sin_theta = jnp.sqrt(1.0 - target_logit ** 2)
    cos_theta_m = target_logit * cos_m - sin_theta * sin_m
    mask = cos_theta > cos_theta_m
    final_target_logit = jnp.where(target_logit > threshold,
                                   cos_theta_m, target_logit - mm)
    t_new = target_logit.mean() * 0.01 + 0.99 * t[0]
    cos_theta = jnp.where(mask, cos_theta * (t_new + cos_theta), cos_theta)
    onehot = jnp.arange(cos_theta.shape[1])[None, :] == targets[:, None]
    cos_theta = jnp.where(onehot, final_target_logit, cos_theta)
    return cos_theta * scale, t_new.reshape(1)


if __name__ == "__main__":
    key = jax.random.PRNGKey(0)
    k_feat, k_w, k_tgt = jax.random.split(key, 3)

    B, D, C = 8, 32, 512            # batch, in_feat, num_classes (small demo)

    features = jax.random.normal(k_feat, (B, D), dtype=jnp.float32)

    # kaiming_uniform_(a=sqrt(1)): gain = sqrt(2/(1+a^2)) = 1,
    # bound = gain * sqrt(3 / fan_in)
    bound = math.sqrt(3.0 / D)
    weight = jax.random.uniform(k_w, (C, D), dtype=jnp.float32,
                                minval=-bound, maxval=bound)

    targets = jax.random.randint(k_tgt, (B,), 0, C, dtype=jnp.int32)
    t_buf = jnp.zeros((1,), dtype=jnp.float32)

    logits, t_new = arcface_logits(features, weight, targets, t_buf,
                                   scale=64.0, margin=0.35, tile_c=128)
    jax.block_until_ready(logits)
    jax.block_until_ready(t_new)

    ref_logits, ref_t = arcface_logits_ref(features, weight, targets, t_buf,
                                           scale=64.0, margin=0.35)
    assert jnp.allclose(logits, ref_logits, atol=5e-2, rtol=1e-3), "logits mismatch"
    assert jnp.allclose(t_new, ref_t, atol=1e-5), "t buffer mismatch"

    print("KERNEL_OK")
</pallas_src>

<mosaic_0001>
module attributes {stable_mosaic.version = 11 : i64} {
  func.func @kernel(%arg0: i32, %arg1: memref<8x32xf32, #tpu.memory_space<vmem>>, %arg2: memref<8x32xf32, #tpu.memory_space<vmem>>, %arg3: memref<8x32xbf16, #tpu.memory_space<vmem>>, %arg4: memref<8x1xf32, #tpu.memory_space<vmem>>, %arg5: memref<8x1xf32, #tpu.memory_space<vmem>>, %arg6: memref<8x1xf32, #tpu.memory_space<vmem>>) attributes {dimension_semantics = [#tpu.dimension_semantics<parallel>], iteration_bounds = array<i64: 1>, scalar_prefetch = 0 : i64, scratch_operands = 0 : i64, tpu.core_type = #tpu.core_type<tc>, window_params = [{transform_indices = @transform_0, window_bounds = array<i64: 8, 32>}, {transform_indices = @transform_1, window_bounds = array<i64: 8, 32>}, {transform_indices = @transform_2, window_bounds = array<i64: 8, 32>}, {transform_indices = @transform_3, window_bounds = array<i64: 8, 1>}, {transform_indices = @transform_4, window_bounds = array<i64: 8, 1>}, {transform_indices = @transform_5, window_bounds = array<i64: 8, 1>}]} {
    %c0 = arith.constant 0 : index
    %c0_0 = arith.constant 0 : index
    %0 = vector.load %arg1[%c0, %c0_0] : memref<8x32xf32, #tpu.memory_space<vmem>>, vector<8x32xf32>
    %1 = arith.mulf %0, %0 : vector<8x32xf32>
    %cst = arith.constant dense<0.000000e+00> : vector<8xf32>
    %2 = vector.multi_reduction <add>, %1, %cst [1] : vector<8x32xf32> to vector<8xf32>
    %3 = vector.shape_cast %2 : vector<8xf32> to vector<8x1xf32>
    %4 = math.sqrt %3 : vector<8x1xf32>
    %cst_1 = arith.constant 9.99999996E-13 : f32
    %5 = vector.broadcast %cst_1 : f32 to vector<8x1xf32>
    %6 = arith.maximumf %4, %5 : vector<8x1xf32>
    %7 = vector.broadcast %6 : vector<8x1xf32> to vector<8x32xf32>
    %8 = arith.divf %0, %7 : vector<8x32xf32>
    %9 = arith.truncf %8 : vector<8x32xf32> to vector<8x32xbf16>
    %c0_2 = arith.constant 0 : index
    %c0_3 = arith.constant 0 : index
    %10 = vector.load %arg3[%c0_2, %c0_3] : memref<8x32xbf16, #tpu.memory_space<vmem>>, vector<8x32xbf16>
    tpu.vector_store %arg3[%c0_2, %c0_3], %9 {strides = array<i32>} : memref<8x32xbf16, #tpu.memory_space<vmem>>, vector<8x32xbf16>,
    %c0_4 = arith.constant 0 : index
    %c0_5 = arith.constant 0 : index
    %11 = vector.load %arg2[%c0_4, %c0_5] : memref<8x32xf32, #tpu.memory_space<vmem>>, vector<8x32xf32>
    %12 = arith.mulf %11, %11 : vector<8x32xf32>
    %cst_6 = arith.constant dense<0.000000e+00> : vector<8xf32>
    %13 = vector.multi_reduction <add>, %12, %cst_6 [1] : vector<8x32xf32> to vector<8xf32>
    %14 = vector.shape_cast %13 : vector<8xf32> to vector<8x1xf32>
    %15 = math.sqrt %14 : vector<8x1xf32>
    %cst_7 = arith.constant 9.99999996E-13 : f32
    %16 = vector.broadcast %cst_7 : f32 to vector<8x1xf32>
    %17 = arith.maximumf %15, %16 : vector<8x1xf32>
    %18 = vector.broadcast %17 : vector<8x1xf32> to vector<8x32xf32>
    %19 = arith.divf %11, %18 : vector<8x32xf32>
    %20 = arith.mulf %8, %19 : vector<8x32xf32>
    %cst_8 = arith.constant dense<0.000000e+00> : vector<8xf32>
    %21 = vector.multi_reduction <add>, %20, %cst_8 [1] : vector<8x32xf32> to vector<8xf32>
    %22 = vector.shape_cast %21 : vector<8xf32> to vector<8x1xf32>
    %cst_9 = arith.constant -1.000000e+00 : f32
    %cst_10 = arith.constant 1.000000e+00 : f32
    %23 = vector.broadcast %cst_9 : f32 to vector<8x1xf32>
    %24 = arith.maximumf %23, %22 : vector<8x1xf32>
    %25 = vector.broadcast %cst_10 : f32 to vector<8x1xf32>
    %26 = arith.minimumf %25, %24 : vector<8x1xf32>
    %c0_11 = arith.constant 0 : index
    %c0_12 = arith.constant 0 : index
    %27 = vector.load %arg6[%c0_11, %c0_12] : memref<8x1xf32, #tpu.memory_space<vmem>>, vector<8x1xf32>
    tpu.vector_store %arg6[%c0_11, %c0_12], %26 {strides = array<i32>} : memref<8x1xf32, #tpu.memory_space<vmem>>, vector<8x1xf32>,
    %28 = arith.mulf %26, %26 : vector<8x1xf32>
    %cst_13 = arith.constant 1.000000e+00 : f32
    %29 = vector.broadcast %cst_13 : f32 to vector<8x1xf32>
    %30 = arith.subf %29, %28 : vector<8x1xf32>
    %31 = math.sqrt %30 : vector<8x1xf32>
    %cst_14 = arith.constant 0.939372718 : f32
    %32 = vector.broadcast %cst_14 : f32 to vector<8x1xf32>
    %33 = arith.mulf %26, %32 : vector<8x1xf32>
    %cst_15 = arith.constant 0.342897803 : f32
    %34 = vector.broadcast %cst_15 : f32 to vector<8x1xf32>
    %35 = arith.mulf %31, %34 : vector<8x1xf32>
    %36 = arith.subf %33, %35 : vector<8x1xf32>
    %c0_16 = arith.constant 0 : index
    %c0_17 = arith.constant 0 : index
    %37 = vector.load %arg4[%c0_16, %c0_17] : memref<8x1xf32, #tpu.memory_space<vmem>>, vector<8x1xf32>
    tpu.vector_store %arg4[%c0_16, %c0_17], %36 {strides = array<i32>} : memref<8x1xf32, #tpu.memory_space<vmem>>, vector<8x1xf32>,
    %cst_18 = arith.constant -0.939372718 : f32
    %38 = vector.broadcast %cst_18 : f32 to vector<8x1xf32>
    %39 = arith.cmpf ogt, %26, %38 : vector<8x1xf32>
    %cst_19 = arith.constant 0.120014235 : f32
    %40 = vector.broadcast %cst_19 : f32 to vector<8x1xf32>
    %41 = arith.subf %26, %40 : vector<8x1xf32>
    %42 = arith.select %39, %36, %41 : vector<8x1xi1>, vector<8x1xf32>
    %c0_20 = arith.constant 0 : index
    %c0_21 = arith.constant 0 : index
    %43 = vector.load %arg5[%c0_20, %c0_21] : memref<8x1xf32, #tpu.memory_space<vmem>>, vector<8x1xf32>
    tpu.vector_store %arg5[%c0_20, %c0_21], %42 {strides = array<i32>} : memref<8x1xf32, #tpu.memory_space<vmem>>, vector<8x1xf32>,
    return
  }
  func.func @transform_0(%arg0: i32) -> (i32, i32) {
    %c0_i32 = arith.constant 0 : i32
    %c0_i32_0 = arith.constant 0 : i32
    return %arg0, %c0_i32 : i32, i32
  }
  func.func @transform_1(%arg0: i32) -> (i32, i32) {
    %c0_i32 = arith.constant 0 : i32
    %c0_i32_0 = arith.constant 0 : i32
    return %arg0, %c0_i32 : i32, i32
  }
  func.func @transform_2(%arg0: i32) -> (i32, i32) {
    %c0_i32 = arith.constant 0 : i32
    %c0_i32_0 = arith.constant 0 : i32
    return %arg0, %c0_i32 : i32, i32
  }
  func.func @transform_3(%arg0: i32) -> (i32, i32) {
    %c0_i32 = arith.constant 0 : i32
    %c0_i32_0 = arith.constant 0 : i32
    return %arg0, %c0_i32 : i32, i32
  }
  func.func @transform_4(%arg0: i32) -> (i32, i32) {
    %c0_i32 = arith.constant 0 : i32
    %c0_i32_0 = arith.constant 0 : i32
    return %arg0, %c0_i32 : i32, i32
  }
  func.func @transform_5(%arg0: i32) -> (i32, i32) {
    %c0_i32 = arith.constant 0 : i32
    %c0_i32_0 = arith.constant 0 : i32
    return %arg0, %c0_i32 : i32, i32
  }
}

</mosaic_0001>

<bundles_post_ra>
// kernel: tpu_custom_call.1
= control target key start
LH: loop header
LB: loop body
LE: loop exit
PB: predicated region body
PF: predicated region fallthrough
CT: control target
= control target key end

     0   :  { %11 = vsyncpa [#allocation3], 0  ;;  %s265_s0 = inlined_call_operand.hbm [shape: f32[8,32], index: 0, kind: input, shape index: {}]   ;;  %s266_s1 = inlined_call_operand.hbm [shape: f32[8,32], index: 1, kind: input, shape index: {}]   ;;  %s267_s2 = inlined_call_operand.hbm [shape: bf16[8,32], index: 2, kind: output, shape index: {0}]   ;;  %s268_s3 = inlined_call_operand.vmem [shape: f32[8,1], index: 3, kind: output, shape index: {1}]   ;;  %s269_s4 = inlined_call_operand.vmem [shape: f32[8,1], index: 4, kind: output, shape index: {2}]   ;;  %s270_s5 = inlined_call_operand.vmem [shape: f32[8,1], index: 5, kind: output, shape index: {3}]  }
   0x1   :  { %12 = vsyncpa [#allocation6], 0 }
   0x2   :  { %13 = vsyncpa [#allocation4], 0  ;;  %s208_s18 = smov [#allocation2]   ;;  %s209_s20 = smov [#allocation5]  }
   0x3   :  { %s20_s19 = sshll.u32 %s208_s18, 4  ;;  %s30_s21 = sshll.u32 %s209_s20, 4  ;;  %s21_s19 = int_to_ptr.vmem [resolvable:$true] %s20_s19  ;;  %s31_s21 = int_to_ptr.vmem [resolvable:$true] %s30_s21 }
   0x4   :  { %s150_s22 = scalar_lea.vmem %s21_s19, 128  ;;  %p155_p1 = scmp.lt.s32.totalorder %s21_s19, %s21_s19 }
   0x5   :  { %p151_p0 = scmp.ne.s32.totalorder %s21_s19, %s150_s22  ;;  %p156_p2 = scmp.lt.s32.totalorder %s150_s22, %s150_s22 }
   0x7   :  { %p157_p3 = por %p156_p2, %p155_p1 }
   0x9   :  { %p158_p4 = pnand %p157_p3, %p151_p0 }
   0xb   :  { %161 = shalt.err (!%p158_p4)
}
   0xc   :  { %23 = dma.hbm_to_vmem [thread:$0]  %s265_s0, 128, %s21_s19, [#allocation3]  }
   0xd   :  { %s170_s25 = scalar_lea.vmem %s31_s21, 128  ;;  %p175_p6 = scmp.lt.s32.totalorder %s31_s21, %s31_s21 }
   0xe   :  { %p171_p5 = scmp.ne.s32.totalorder %s31_s21, %s170_s25  ;;  %p176_p7 = scmp.lt.s32.totalorder %s170_s25, %s170_s25 }
  0x10   :  { %p177_p8 = por %p176_p7, %p175_p6 }
  0x12   :  { %p178_p9 = pnand %p177_p8, %p171_p5 }
  0x14   :  { %181 = shalt.err (!%p178_p9)
}
  0x15   :  { %33 = dma.hbm_to_vmem [thread:$0]  %s266_s1, 128, %s31_s21, [#allocation6]  }
  0x16   :  { %202 = dma.done.wait [#allocation3], 128  }
  0x17   :  { %203 = vsyncadd [#allocation3], 4294967168 }
  0x18   :  { %204 = dma.done.wait [#allocation6], 128  }
  0x19   :  { %205 = vsyncadd [#allocation6], 4294967168  ;;  %v40_v0 = vld [vmem:[#allocation2] sm:$0xff]  ;;  %vm42_vm0 = vcmask 261120   ;;  %v59_v1 = vld [vmem:[#allocation5] sm:$0xff]  ;;  %vm57_vm5 = vcmask 257024  }
  0x1a   :  { %v41_v2 = vmul.f32 %v40_v0, %v40_v0  ;;  %v60_v3 = vmul.f32 %v59_v1, %v59_v1  ;;  %s210_s0 = smov [#allocation7]  }
  0x1b   :  { %s105_s1 = sshll.u32 %s210_s0, 4  ;;  %s106_s1 = int_to_ptr.vmem [resolvable:$true] %s105_s1 }
  0x1c   :  { %v43_v4 = vsel %vm42_vm0, %v41_v2, 0.0  ;;  %v61_v5 = vsel %vm42_vm0, %v60_v3, 0.0  ;;  %s182_s28 = scalar_lea.vmem %s106_s1, 64  ;;  %p187_p11 = scmp.lt.s32.totalorder %s106_s1, %s106_s1 }
  0x1d   :  { %44 = vadd.xlane.f32.xlu0 %v43_v4  ;;  %p183_p10 = scmp.ne.s32.totalorder %s106_s1, %s182_s28  ;;  %p188_p12 = scmp.lt.s32.totalorder %s182_s28, %s182_s28 }
  0x1f   :  { %p189_p13 = por %p188_p12, %p187_p11 }
  0x21   :  { %62 = vadd.xlane.f32.xlu0 %v61_v5  ;;  %p190_p0 = pnand %p189_p13, %p183_p10 }
  0xa6   :  { %v45_v6 = vpop.xlane.xlu0 %44 }
  0xa7   :  { %132 = vrsqrt.f32 %v45_v6  ;;  %vm48_vm1 = vcmp.eq.f32.partialorder %v45_v6, inf  ;;  %v51_v10 = vand.u32 2147483648, %v45_v6  ;;  %vm50_vm2 = vcmp.eq.f32.partialorder %v45_v6, 0.0 }
  0xaa   :  { %v63_v7 = vpop.xlane.xlu0 %62 }
  0xab   :  { %134 = vrsqrt.f32 %v63_v7  ;;  %vm66_vm3 = vcmp.eq.f32.partialorder %v63_v7, inf  ;;  %v69_v16 = vand.u32 2147483648, %v63_v7  ;;  %vm68_vm4 = vcmp.eq.f32.partialorder %v63_v7, 0.0 }
  0xb4   :  { %v133_v8 = vpop.eup %132 }
  0xb5   :  { %v47_v9 = vmul.f32 %v133_v8, %v45_v6 }
  0xb7   :  { %v49_v11 = vsel %vm48_vm1, %v45_v6, %v47_v9 }
  0xb8   :  { %v135_v12 = vpop.eup %134  ;;  %v52_v13 = vsel %vm50_vm2, %v51_v10, %v49_v11 }
  0xb9   :  { %v53_v14 = vmax.f32 %v52_v13, 1e-12  ;;  %v65_v15 = vmul.f32 %v135_v12, %v63_v7 }
  0xbb   :  { %136 = vrcp.f32 %v53_v14  ;;  %v67_v17 = vsel %vm66_vm3, %v63_v7, %v65_v15 }
  0xbc   :  { %v70_v18 = vsel %vm68_vm4, %v69_v16, %v67_v17 }
  0xbd   :  { %v71_v19 = vmax.f32 %v70_v18, 1e-12 }
  0xbf   :  { %138 = vrcp.f32 %v71_v19 }
  0xc8   :  { %v137_v20 = vpop.eup %136 }
  0xc9   :  { %v55_v21 = vmul.f32 %v137_v20, %v40_v0 }
  0xcb   :  { %v56_v22 = vpack.c.bf16 %v55_v21, %v55_v21 }
  0xcc   :  { %v139_v23 = vpop.eup %138 }
  0xcd   :  { %v73_v24 = vmul.f32 %v139_v23, %v59_v1  ;;  %58 = vst.msk [vmem:[#allocation7] sm:$0xf] %vm57_vm5, %v56_v22 }
  0xcf   :  { %v74_v25 = vmul.f32 %v73_v24, %v55_v21 }
  0xd1   :  { %v75_v26 = vsel %vm42_vm0, %v74_v25, 0.0 }
  0xd2   :  { %76 = vadd.xlane.f32.xlu1 %v75_v26 }
  0xd3   :  { %193 = shalt.err (!%p190_p0)
}
  0xd4   :  { %108 = dma.vmem_to_hbm [thread:$0]  %s106_s1, 64, %s267_s2, [#allocation4]   ;;  %vm80_vm6 = vcmask 7168  }
 0x15b   :  { %v77_v27 = vpop.xlane.xlu1 %76 }
 0x15c   :  { %v127_v28 = vclamps-f32 %v77_v27, 1.0 }
 0x15e   :  { %81 = vst.msk [vmem:[%s270_s5] sm:$0xff] %vm80_vm6, %v127_v28  ;;  %v82_v29 = vmul.f32 %v127_v28, %v127_v28  ;;  %v91_v36 = vmul.f32 0.9393727, %v127_v28  ;;  %v128_v39 = vadd.f32 -0.120014235, %v127_v28 }
 0x15f   :  { %vm95_vm9 = vcmp.gt.f32.partialorder %v127_v28, -0.9393727 }
 0x160   :  { %v83_v30 = vsub.f32 1.0, %v82_v29 }
 0x162   :  { %140 = vrsqrt.f32 %v83_v30  ;;  %vm86_vm7 = vcmp.eq.f32.partialorder %v83_v30, inf  ;;  %v89_v33 = vand.u32 2147483648, %v83_v30  ;;  %vm88_vm8 = vcmp.eq.f32.partialorder %v83_v30, 0.0 }
 0x16f   :  { %v141_v31 = vpop.eup %140 }
 0x170   :  { %v85_v32 = vmul.f32 %v141_v31, %v83_v30 }
 0x172   :  { %v87_v34 = vsel %vm86_vm7, %v83_v30, %v85_v32 }
 0x173   :  { %v90_v35 = vsel %vm88_vm8, %v89_v33, %v87_v34 }
 0x174   :  { %v92_v37 = vmul.f32 0.3428978, %v90_v35 }
 0x176   :  { %v93_v38 = vsub.f32 %v91_v36, %v92_v37 }
 0x178   :  { %94 = vst.msk [vmem:[%s268_s3] sm:$0xff] %vm80_vm6, %v93_v38  ;;  %v97_v40 = vsel %vm95_vm9, %v93_v38, %v128_v39 }
 0x179   :  { %98 = vst.msk [vmem:[%s269_s4] sm:$0xff] %vm80_vm6, %v97_v40 }
 0x17a   :  { %206 = dma.done.wait [#allocation4], 64  }
 0x17b   :  { %207 = vsyncadd [#allocation4], 4294967232 }
 0x17c   :  { %124 = vsyncpa [#allocation3], 1 }
 0x17d   :  { %125 = vsyncpa [#allocation6], 1 }
 0x17e   :  { %126 = vsyncpa [#allocation4], 1 }

</bundles_post_ra>
